<compile_context>
chip_gen: v5e
topology: v5e:2x2
jax: 0.10.0
libtpu: 0.0.40
codegen_flags: <defaults>
</compile_context>

<pallas_src>
import functools

import jax
import jax.numpy as jnp
from jax.experimental import pallas as pl
from jax.experimental.pallas import tpu as pltpu


def quanted_matmul_kernel(x_ref, w_ref, b_ref, o_ref, acc_ref):
    """One (tm, tn) output tile, accumulated over the K grid axis.

    x_ref : VMEM (tm, tk) bf16   activation tile (scale/zero_point already folded)
    w_ref : VMEM (tk, tn) bf16   folded weight tile  (= W^T / scale)
    b_ref : VMEM (1,  tn) f32    folded bias tile    (= b + zp * rowsum(W))
    o_ref : VMEM (tm, tn)        output tile (x.dtype)
    acc_ref: VMEM (tm, tn) f32   accumulator scratch (persists across the K axis)
    """
    @pl.when(pl.program_id(2) == 0)
    def _init():
        acc_ref[...] = jnp.zeros_like(acc_ref)

    acc_ref[...] += jnp.dot(
        x_ref[...], w_ref[...], preferred_element_type=jnp.float32
    )

    @pl.when(pl.program_id(2) == pl.num_programs(2) - 1)
    def _finalize():
        o_ref[...] = (acc_ref[...] + b_ref[...]).astype(o_ref.dtype)


def _round_up(x, m):
    return ((x + m - 1) // m) * m


@functools.partial(jax.jit, static_argnames=("tm", "tn", "tk"))
def quanted_model_forward(x, scale, zero_point, weight, bias, *,
                          tm=256, tn=256, tk=512):
    """x: (B, S, H_in) ; weight: (H_out, H_in) PyTorch Linear layout ; bias: (H_out,)."""
    B, S, H_in_x = x.shape
    H_out, H_in = weight.shape
    assert H_in_x == H_in
    M = B * S

    # ---- Fold the quant pre-scale into the (static) weight / bias --------------
    #   (x / s + z) @ W^T + b  ==  x @ (W^T / s)  +  (z * sum_k W[:, k] + b)
    # Done once per call in plain JAX; transpose fuses with the scaling under jit,
    # so no separate weight.T copy is written to HBM.
    inv_s = 1.0 / scale[0]
    zp = zero_point[0]
    w_folded = (weight * inv_s).T                       # (H_in, H_out)
    b_folded = bias + zp * jnp.sum(weight, axis=1)      # (H_out,)

    # ---- Tile sizes: clamp to the (aligned) problem size ------------------------
    # lane dims multiples of 128, sublane multiples of 16 (bf16 packing).
    tm = min(tm, _round_up(M, 16))
    tk = min(tk, _round_up(H_in, 128))
    tn = min(tn, _round_up(H_out, 128))
    Mp, Kp, Np = _round_up(M, tm), _round_up(H_in, tk), _round_up(H_out, tn)

    # ---- Pad to lane-dense shapes and cast MXU operands to bf16 ----------------
    # Zero padding leaves the matmul result unchanged.  (f32 accumulation in-kernel.)
    x2d = x.reshape(M, H_in)
    x_p = jnp.zeros((Mp, Kp), jnp.bfloat16).at[:M, :H_in].set(x2d.astype(jnp.bfloat16))
    w_p = jnp.zeros((Kp, Np), jnp.bfloat16).at[:H_in, :H_out].set(
        w_folded.astype(jnp.bfloat16))
    b_p = jnp.zeros((1, Np), jnp.float32).at[:, :H_out].set(
        b_folded.astype(jnp.float32))

    out_dtype = x.dtype
    grid = (Mp // tm, Np // tn, Kp // tk)

    # Double-buffered input/output tiles + f32 accumulator, plus margin.
    out_itemsize = jnp.dtype(out_dtype).itemsize
    vmem_bytes = (2 * (tm * tk * 2 + tk * tn * 2 + tn * 4 + tm * tn * out_itemsize)
                  + tm * tn * 4)
    vmem_limit = int(min(max(vmem_bytes + (8 << 20), 32 << 20), 64 << 20))

    out_p = pl.pallas_call(
        quanted_matmul_kernel,
        out_shape=jax.ShapeDtypeStruct((Mp, Np), out_dtype),
        grid_spec=pltpu.PrefetchScalarGridSpec(
            num_scalar_prefetch=0,
            grid=grid,
            in_specs=[
                pl.BlockSpec((tm, tk), lambda i, j, k: (i, k)),   # x
                pl.BlockSpec((tk, tn), lambda i, j, k: (k, j)),   # W^T / s
                pl.BlockSpec((1, tn), lambda i, j, k: (0, j)),    # folded bias
            ],
            out_specs=pl.BlockSpec((tm, tn), lambda i, j, k: (i, j)),
            scratch_shapes=[pltpu.VMEM((tm, tn), jnp.float32)],
        ),
        compiler_params=pltpu.CompilerParams(
            dimension_semantics=("parallel", "parallel", "arbitrary"),
            vmem_limit_bytes=vmem_limit,
        ),
    )(x_p, w_p, b_p)

    return out_p[:M, :H_out].reshape(B, S, H_out)


if __name__ == "__main__":
    key = jax.random.PRNGKey(0)
    kx, kw, kb = jax.random.split(key, 3)

    B, S, H = 2, 8, 32

    x = jax.random.normal(kx, (B, S, H), dtype=jnp.float32)
    # Deterministic "parameter_model" weights: Linear(H, H), PyTorch layout.
    weight = jax.random.normal(kw, (H, H), dtype=jnp.float32) * 0.1
    bias = jax.random.normal(kb, (H,), dtype=jnp.float32) * 0.1

    # Registered buffers from QuantedModel.__init__
    scale = jnp.array([1.0], dtype=jnp.float32)
    zero_point = jnp.array([0.0], dtype=jnp.float32)

    out = quanted_model_forward(x, scale, zero_point, weight, bias)
    out = jax.block_until_ready(out)

    # Reference in plain JAX f32 (original module semantics).
    ref = ((x / scale[0] + zero_point[0]).reshape(B * S, H) @ weight.T + bias
           ).reshape(B, S, H)

    # bf16 MXU operands -> tolerance loosened vs the pure-f32 reference.
    assert out.shape == ref.shape
    assert jnp.allclose(out, ref, atol=2e-2, rtol=2e-2), (
        "mismatch vs reference, max abs diff = "
        f"{float(jnp.max(jnp.abs(out - ref)))}")

    print("KERNEL_OK")
</pallas_src>

<mosaic_0001>
module attributes {stable_mosaic.version = 11 : i64} {
  func.func @quanted_matmul_kernel(%arg0: i32, %arg1: i32, %arg2: i32, %arg3: memref<16x128xbf16, #tpu.memory_space<vmem>>, %arg4: memref<128x128xbf16, #tpu.memory_space<vmem>>, %arg5: memref<1x128xf32, #tpu.memory_space<vmem>>, %arg6: memref<16x128xf32, #tpu.memory_space<vmem>>, %arg7: memref<16x128xf32, #tpu.memory_space<vmem>>) attributes {dimension_semantics = [#tpu.dimension_semantics<parallel>, #tpu.dimension_semantics<parallel>, #tpu.dimension_semantics<arbitrary>], iteration_bounds = array<i64: 1, 1, 1>, scalar_prefetch = 0 : i64, scratch_operands = 1 : i64, tpu.core_type = #tpu.core_type<tc>, window_params = [{transform_indices = @transform_0, window_bounds = array<i64: 16, 128>}, {transform_indices = @transform_1, window_bounds = array<i64: 128, 128>}, {transform_indices = @transform_2, window_bounds = array<i64: 1, 128>}, {transform_indices = @transform_3, window_bounds = array<i64: 16, 128>}]} {
    %c0_i32 = arith.constant 0 : i32
    %0 = arith.cmpi eq, %arg2, %c0_i32 : i32
    %1 = arith.extui %0 : i1 to i32
    %c0_i32_0 = arith.constant 0 : i32
    %2 = arith.cmpi ne, %1, %c0_i32_0 : i32
    scf.if %2 {
      %cst_10 = arith.constant 0.000000e+00 : f32
      %12 = vector.broadcast %cst_10 : f32 to vector<16x128xf32>
      %c0_11 = arith.constant 0 : index
      %c0_12 = arith.constant 0 : index
      %13 = vector.load %arg7[%c0_11, %c0_12] : memref<16x128xf32, #tpu.memory_space<vmem>>, vector<16x128xf32>
      tpu.vector_store %arg7[%c0_11, %c0_12], %12 {strides = array<i32>} : memref<16x128xf32, #tpu.memory_space<vmem>>, vector<16x128xf32>,
    } else {
    }
    %c0 = arith.constant 0 : index
    %c0_1 = arith.constant 0 : index
    %3 = vector.load %arg7[%c0, %c0_1] : memref<16x128xf32, #tpu.memory_space<vmem>>, vector<16x128xf32>
    %c0_2 = arith.constant 0 : index
    %c0_3 = arith.constant 0 : index
    %4 = vector.load %arg3[%c0_2, %c0_3] : memref<16x128xbf16, #tpu.memory_space<vmem>>, vector<16x128xbf16>
    %c0_4 = arith.constant 0 : index
    %c0_5 = arith.constant 0 : index
    %5 = vector.load %arg4[%c0_4, %c0_5] : memref<128x128xbf16, #tpu.memory_space<vmem>>, vector<128x128xbf16>
    %cst = arith.constant dense<0.000000e+00> : vector<16x128xf32>
    %6 = tpu.matmul %4, %5, %cst {dimension_numbers = #tpu.dot_dimension_numbers<[1], [0], [0], [1], [0, 0, 1, 1], [], []>} : vector<16x128xbf16>, vector<128x128xbf16>, vector<16x128xf32> -> vector<16x128xf32>
    %7 = arith.addf %3, %6 : vector<16x128xf32>
    %c0_6 = arith.constant 0 : index
    %c0_7 = arith.constant 0 : index
    %8 = vector.load %arg7[%c0_6, %c0_7] : memref<16x128xf32, #tpu.memory_space<vmem>>, vector<16x128xf32>
    tpu.vector_store %arg7[%c0_6, %c0_7], %7 {strides = array<i32>} : memref<16x128xf32, #tpu.memory_space<vmem>>, vector<16x128xf32>,
    %c0_i32_8 = arith.constant 0 : i32
    %9 = arith.cmpi eq, %arg2, %c0_i32_8 : i32
    %10 = arith.extui %9 : i1 to i32
    %c0_i32_9 = arith.constant 0 : i32
    %11 = arith.cmpi ne, %10, %c0_i32_9 : i32
    scf.if %11 {
      %c0_10 = arith.constant 0 : index
      %c0_11 = arith.constant 0 : index
      %12 = vector.load %arg7[%c0_10, %c0_11] : memref<16x128xf32, #tpu.memory_space<vmem>>, vector<16x128xf32>
      %c0_12 = arith.constant 0 : index
      %c0_13 = arith.constant 0 : index
      %13 = vector.load %arg5[%c0_12, %c0_13] : memref<1x128xf32, #tpu.memory_space<vmem>>, vector<1x128xf32>
      %14 = vector.broadcast %13 : vector<1x128xf32> to vector<16x128xf32>
      %15 = arith.addf %12, %14 : vector<16x128xf32>
      %c0_14 = arith.constant 0 : index
      %c0_15 = arith.constant 0 : index
      %16 = vector.load %arg6[%c0_14, %c0_15] : memref<16x128xf32, #tpu.memory_space<vmem>>, vector<16x128xf32>
      tpu.vector_store %arg6[%c0_14, %c0_15], %15 {strides = array<i32>} : memref<16x128xf32, #tpu.memory_space<vmem>>, vector<16x128xf32>,
    } else {
    }
    return
  }
  func.func @transform_0(%arg0: i32, %arg1: i32, %arg2: i32) -> (i32, i32) {
    %c0_i32 = arith.constant 0 : i32
    return %arg0, %arg2 : i32, i32
  }
  func.func @transform_1(%arg0: i32, %arg1: i32, %arg2: i32) -> (i32, i32) {
    %c0_i32 = arith.constant 0 : i32
    return %arg2, %arg1 : i32, i32
  }
  func.func @transform_2(%arg0: i32, %arg1: i32, %arg2: i32) -> (i32, i32) {
    %c0_i32 = arith.constant 0 : i32
    %c0_i32_0 = arith.constant 0 : i32
    return %c0_i32, %arg1 : i32, i32
  }
  func.func @transform_3(%arg0: i32, %arg1: i32, %arg2: i32) -> (i32, i32) {
    %c0_i32 = arith.constant 0 : i32
    return %arg0, %arg1 : i32, i32
  }
}

</mosaic_0001>

<bundles_post_ra>
// kernel: quanted_model_forward.1
= control target key start
LH: loop header
LB: loop body
LE: loop exit
PB: predicated region body
PF: predicated region fallthrough
CT: control target
= control target key end

     0   :  { %s231_s1 = inlined_call_operand.vmem [shape: bf16[128,128], index: 1, kind: input, shape index: {}]   ;;  %s232_s2 = inlined_call_operand.vmem [shape: f32[1,128], index: 2, kind: input, shape index: {}]   ;;  %s233_s0 = inlined_call_operand.vmem [shape: bf16[16,128], index: 0, kind: input, shape index: {}]   ;;  %s234_s3 = inlined_call_operand.vmem [shape: f32[16,128], index: 3, kind: output, shape index: {}]  }
   0x1   :  { %v173_v0 = vld [vmem:[%s231_s1 + $0x38] sm:$0xff]  ;;  %v172_v1 = vld [vmem:[%s231_s1 + $0x30] sm:$0xff]  ;;  %v171_v2 = vld [vmem:[%s231_s1 + $0x28] sm:$0xff] }
   0x2   :  { %94 = vmatpush.bf16.msra.mxu0 %v173_v0  ;;  %v170_v3 = vld [vmem:[%s231_s1 + $0x20] sm:$0xff]  ;;  %v169_v4 = vld [vmem:[%s231_s1 + $0x18] sm:$0xff]  ;;  %v168_v5 = vld [vmem:[%s231_s1 + $0x10] sm:$0xff] }
   0x3   :  { %v167_v6 = vld [vmem:[%s231_s1 + $0x8] sm:$0xff]  ;;  %v166_v7 = vld [vmem:[%s231_s1] sm:$0xff] }
   0x4   :  { %v165_v8 = vld [vmem:[%s233_s0] sm:$0xff] }
   0x5   :  { %v174_v9 = vld [vmem:[%s232_s2] ss:$0 sm:$0xff] }
   0x6   :  { %95 = vmatpush.bf16.msra.mxu0 %v172_v1 }
   0xa   :  { %96 = vmatpush.bf16.msra.mxu0 %v171_v2 }
   0xe   :  { %97 = vmatpush.bf16.msra.mxu0 %v170_v3 }
  0x12   :  { %98 = vmatpush.bf16.msra.mxu0 %v169_v4 }
  0x16   :  { %99 = vmatpush.bf16.msra.mxu0 %v168_v5 }
  0x1a   :  { %100 = vmatpush.bf16.msra.mxu0 %v167_v6 }
  0x1e   :  { %101 = vmatpush.bf16.msra.mxu0 %v166_v7 }
  0x21   :  { %102 = vmatmul.bf16.vlgmr.msra.gmra.mxu0 %v165_v8 }
  0x9e   :  { %v103_v10 = vpop.f32.mrf.mxu0 }
  0x9f   :  { %v121_v11 = vadd.f32 %v174_v9, %v103_v10 }
  0xa1   :  { %123 = vst [vmem:[%s234_s3] sm:$0xff] %v121_v11 }
  0xa6   :  { %v105_v12 = vpop.f32.mrf.mxu0 }
  0xa7   :  { %v122_v13 = vadd.f32 %v174_v9, %v105_v12 }
  0xa9   :  { %124 = vst [vmem:[%s234_s3 + $0x8] sm:$0xff] %v122_v13 }

</bundles_post_ra>
